<compile_context>
chip_gen: v5e
topology: v5e:2x2
jax: 0.10.0
libtpu: 0.0.40
codegen_flags: <defaults>
</compile_context>

<pallas_src>
import math

import jax
import jax.numpy as jnp
from jax.experimental import pallas as pl
from jax.experimental.pallas import tpu as pltpu


def _constant_embed_kernel(w_ref, o_ref):
    # w_ref: (1, W) resident weight row, already in the output dtype.
    # o_ref: (TM, W) output tile.  One whole-tile broadcast + store per step.
    o_ref[...] = jnp.broadcast_to(w_ref[...], o_ref.shape)


def _broadcast_rows(row_w: jax.Array, R: int, W: int) -> jax.Array:
    """Broadcast a (1, W) row (already out dtype) to an (R, W) slab via Pallas."""
    itemsize = jnp.dtype(row_w.dtype).itemsize
    bytes_per_row = W * itemsize

    # --- Row-tile sizing ------------------------------------------------------
    budget_bytes = 8 * 1024 * 1024                  # ~8 MiB block (16 MiB dbuf)
    floor_bytes = 1 * 1024 * 1024                   # don't shrink blocks below ~1 MiB
    tm_budget = max(1, budget_bytes // bytes_per_row)
    floor_rows = max(1, floor_bytes // bytes_per_row)
    tm_steps = -(-R // 4)                           # aim for >= 4 grid steps (v7x 2 TCs + pipeline)
    tm = min(tm_budget, max(tm_steps, floor_rows))
    if tm >= R or R <= 8:
        tm = R                                      # full extent: always legal
    else:
        tm = max(8, (tm // 8) * 8)                  # obey the (8, 128) block rule

    grid = (pl.cdiv(R, tm),)

    # VMEM limit from actual footprint: double-buffered output + weight + slack.
    vmem_bytes = 2 * tm * bytes_per_row + 2 * bytes_per_row + (1 << 20)
    vmem_bytes = min(max(vmem_bytes, 4 << 20), 64 << 20)

    return pl.pallas_call(
        _constant_embed_kernel,
        out_shape=jax.ShapeDtypeStruct((R, W), row_w.dtype),
        grid=grid,
        in_specs=[pl.BlockSpec((1, W), lambda i: (0, 0))],   # weight resident across steps
        out_specs=pl.BlockSpec((tm, W), lambda i: (i, 0)),
        compiler_params=pltpu.CompilerParams(
            dimension_semantics=("parallel",),                # shard row tiles across TCs (v7x)
            vmem_limit_bytes=vmem_bytes,
        ),
    )(row_w)


def constant_embedding(weight: jax.Array, tokens: jax.Array, *, out_dtype=None) -> jax.Array:
    """ConstantEmbedding forward.  weight: (1, H); tokens: (B, T) (shape-only).

    Returns (B, T, H): the single embedding row broadcast over (B, T).
    out_dtype: optional narrower store dtype (e.g. jnp.bfloat16).  The kernel is
    purely HBM-write-bound, so narrowing halves wall-clock; defaults to
    weight.dtype to match the PyTorch f32 reference (opt-in only).
    """
    B, T = tokens.shape
    H = weight.shape[-1]
    weight = weight.reshape(1, H)
    out_dtype = weight.dtype if out_dtype is None else jnp.dtype(out_dtype)
    itemsize = jnp.dtype(out_dtype).itemsize
    weight = weight.astype(out_dtype)               # cast once in the wrapper

    BT = B * T
    total_bytes = BT * H * itemsize

    # Tiny outputs: pallas_call launch/pipeline overhead dominates sub-us writes.
    if total_bytes < 256 * 1024:
        return jnp.broadcast_to(weight.reshape(1, 1, H), (B, T, H))

    # --- Lane-dense flattened layout (R, W) -----------------------------------
    if H % 128 == 0:
        W, reps = H, 1
    else:
        W = (H * 128) // math.gcd(H, 128)           # lcm(H, 128): unmasked vst lanes
        reps = W // H

    # Pre-tile the weight to (1, W) outside the kernel (no per-step XLU work).
    row_w = jnp.tile(weight, (1, reps)) if reps > 1 else weight

    R_main = BT // reps                              # slab rows on the lane-dense path
    rem = BT - R_main * reps                         # < reps ragged leftover rows

    parts = []
    if R_main > 0:
        main = _broadcast_rows(row_w, R_main, W).reshape(R_main * reps, H)
        parts.append(main)
    if rem > 0:
        # Handful of ragged rows (< reps): plain broadcast keeps the bulk unmasked.
        parts.append(jnp.broadcast_to(weight, (rem, H)))

    flat = parts[0] if len(parts) == 1 else jnp.concatenate(parts, axis=0)
    return flat.reshape(B, T, H)


if __name__ == "__main__":
    key = jax.random.PRNGKey(0)
    k1, k2, k3, k4 = jax.random.split(key, 4)

    # 1) Module-scale demo shape (batch=2, T=8, hidden=32) -> tiny-output bypass.
    B, T, H = 2, 8, 32
    w = jax.random.normal(k1, (1, H), dtype=jnp.float32)
    tok = jnp.zeros((B, T), dtype=jnp.int32)
    out = jax.block_until_ready(constant_embedding(w, tok))
    ref = jnp.broadcast_to(w.reshape(1, 1, H), (B, T, H))
    assert out.shape == (B, T, H) and out.dtype == jnp.float32
    assert jnp.array_equal(out, ref)

    # 2) Kernel path, H % 128 == 0 (native lane-dense): batch=4, T=64, hidden=256.
    B, T, H = 4, 64, 256
    w = jax.random.normal(k2, (1, H), dtype=jnp.float32)
    tok = jnp.zeros((B, T), dtype=jnp.int32)
    out = jax.block_until_ready(constant_embedding(w, tok))
    ref = jnp.broadcast_to(w.reshape(1, 1, H), (B, T, H))
    assert jnp.array_equal(out, ref)

    # 3) Kernel path, ragged H (96): lane-dense via W = lcm(96, 128) = 384, reps = 4.
    B, T, H = 4, 300, 96
    w = jax.random.normal(k3, (1, H), dtype=jnp.float32)
    tok = jnp.zeros((B, T), dtype=jnp.int32)
    out = jax.block_until_ready(constant_embedding(w, tok))
    ref = jnp.broadcast_to(w.reshape(1, 1, H), (B, T, H))
    assert jnp.array_equal(out, ref)

    # 4) Ragged H with leftover rows (B*T % reps != 0): split main/remainder path.
    B, T, H = 5, 201, 96
    w = jax.random.normal(k4, (1, H), dtype=jnp.float32)
    tok = jnp.zeros((B, T), dtype=jnp.int32)
    out = jax.block_until_ready(constant_embedding(w, tok))
    ref = jnp.broadcast_to(w.reshape(1, 1, H), (B, T, H))
    assert jnp.array_equal(out, ref)

    print("KERNEL_OK")
</pallas_src>

<mosaic_0001>
module attributes {stable_mosaic.version = 11 : i64} {
  func.func @_constant_embed_kernel(%arg0: i32, %arg1: memref<1x256xf32, #tpu.memory_space<vmem>>, %arg2: memref<256x256xf32, #tpu.memory_space<vmem>>) attributes {dimension_semantics = [#tpu.dimension_semantics<parallel>], iteration_bounds = array<i64: 1>, scalar_prefetch = 0 : i64, scratch_operands = 0 : i64, tpu.core_type = #tpu.core_type<tc>, window_params = [{pipeline_mode = #tpu.pipeline_mode<synchronous>, transform_indices = @transform_0, window_bounds = array<i64: 1, 256>}, {transform_indices = @transform_1, window_bounds = array<i64: 256, 256>}]} {
    %c0 = arith.constant 0 : index
    %c0_0 = arith.constant 0 : index
    %0 = vector.load %arg1[%c0, %c0_0] : memref<1x256xf32, #tpu.memory_space<vmem>>, vector<1x256xf32>
    %1 = vector.shape_cast %0 : vector<1x256xf32> to vector<1x256xf32>
    %2 = vector.broadcast %1 : vector<1x256xf32> to vector<256x256xf32>
    %c0_1 = arith.constant 0 : index
    %c0_2 = arith.constant 0 : index
    %3 = vector.load %arg2[%c0_1, %c0_2] : memref<256x256xf32, #tpu.memory_space<vmem>>, vector<256x256xf32>
    tpu.vector_store %arg2[%c0_1, %c0_2], %2 {strides = array<i32>} : memref<256x256xf32, #tpu.memory_space<vmem>>, vector<256x256xf32>,
    return
  }
  func.func @transform_0(%arg0: i32) -> (i32, i32) {
    %c0_i32 = arith.constant 0 : i32
    %c0_i32_0 = arith.constant 0 : i32
    %c0_i32_1 = arith.constant 0 : i32
    return %c0_i32, %c0_i32_0 : i32, i32
  }
  func.func @transform_1(%arg0: i32) -> (i32, i32) {
    %c0_i32 = arith.constant 0 : i32
    %c0_i32_0 = arith.constant 0 : i32
    return %arg0, %c0_i32 : i32, i32
  }
}

</mosaic_0001>

<bundles_post_ra>
// kernel: tpu_custom_call.1
= control target key start
LH: loop header
LB: loop body
LE: loop exit
PB: predicated region body
PF: predicated region fallthrough
CT: control target
= control target key end

     0   :  { %6 = vsyncpa [#allocation3], 0  ;;  %s188_s0 = inlined_call_operand.hbm [shape: f32[1,256], index: 0, kind: input, shape index: {}]   ;;  %s189_s1 = inlined_call_operand.hbm [shape: f32[256,256], index: 1, kind: output, shape index: {}]  }
   0x1   :  { %7 = vsyncpa [#allocation4], 0  ;;  %s13_s8 = sshll.u32 %s188_s0, 4  ;;  %s168_s9 = smov [#allocation2]   ;;  %s14_s8 = int_to_ptr.hbm [resolvable:$true] %s13_s8 }
   0x2   :  { %s15_s10 = sshll.u32 %s168_s9, 4  ;;  %s16_s10 = int_to_ptr.vmem [resolvable:$true] %s15_s10 }
   0x3   :  { %18 = dma.hbm_to_vmem [thread:$0]  %s14_s8, 32, %s16_s10, [#allocation3]  }
   0x4   :  { %164 = dma.done.wait [#allocation3], 32  }
   0x5   :  { %165 = vsyncadd [#allocation3], 4294967264  ;;  %v23_v0 = vld [vmem:[#allocation2] sm:$0x3]  ;;  %s169_s0 = smov [#allocation5]   ;;  %s99_s14 = sshll.u32 %s189_s1, 4  ;;  %s100_s14 = int_to_ptr.hbm [resolvable:$true] %s99_s14 }
   0x6   :  { %v25_v1 = vperm.slane %v23_v0, 0  ;;  %v26_v2 = vperm.slane %v23_v0, 1  ;;  %s97_s11 = sshll.u32 %s169_s0, 4  ;;  %s170_s15 = smov 256   ;;  %s98_s11 = int_to_ptr.vmem [resolvable:$true] %s97_s11 }
   0x7   :  { %s171_s16 = smov 16  }
   0x8   :  { %29 = vst [vmem:[#allocation5] sm:$0xff] %v25_v1 }
   0x9   :  { %31 = vst [vmem:[#allocation5 + $0x10] sm:$0xff] %v25_v1 }
   0xa   :  { %33 = vst [vmem:[#allocation5 + $0x20] sm:$0xff] %v25_v1 }
   0xb   :  { %35 = vst [vmem:[#allocation5 + $0x30] sm:$0xff] %v25_v1 }
   0xc   :  { %37 = vst [vmem:[#allocation5 + $0x40] sm:$0xff] %v25_v1 }
   0xd   :  { %39 = vst [vmem:[#allocation5 + $0x50] sm:$0xff] %v25_v1 }
   0xe   :  { %41 = vst [vmem:[#allocation5 + $0x60] sm:$0xff] %v25_v1 }
   0xf   :  { %43 = vst [vmem:[#allocation5 + $0x70] sm:$0xff] %v25_v1 }
  0x10   :  { %45 = vst [vmem:[#allocation5 + $0x80] sm:$0xff] %v25_v1 }
  0x11   :  { %47 = vst [vmem:[#allocation5 + $0x90] sm:$0xff] %v25_v1 }
  0x12   :  { %49 = vst [vmem:[#allocation5 + $0xa0] sm:$0xff] %v25_v1 }
  0x13   :  { %51 = vst [vmem:[#allocation5 + $0xb0] sm:$0xff] %v25_v1 }
  0x14   :  { %53 = vst [vmem:[#allocation5 + $0xc0] sm:$0xff] %v25_v1 }
  0x15   :  { %55 = vst [vmem:[#allocation5 + $0xd0] sm:$0xff] %v25_v1 }
  0x16   :  { %57 = vst [vmem:[#allocation5 + $0xe0] sm:$0xff] %v25_v1 }
  0x17   :  { %59 = vst [vmem:[#allocation5 + $0xf0] sm:$0xff] %v25_v1 }
  0x18   :  { %61 = vst [vmem:[#allocation5 + $0x100] sm:$0xff] %v25_v1 }
  0x19   :  { %63 = vst [vmem:[#allocation5 + $0x110] sm:$0xff] %v25_v1 }
  0x1a   :  { %65 = vst [vmem:[#allocation5 + $0x120] sm:$0xff] %v25_v1 }
  0x1b   :  { %67 = vst [vmem:[#allocation5 + $0x130] sm:$0xff] %v25_v1 }
  0x1c   :  { %69 = vst [vmem:[#allocation5 + $0x140] sm:$0xff] %v25_v1 }
  0x1d   :  { %71 = vst [vmem:[#allocation5 + $0x150] sm:$0xff] %v25_v1 }
  0x1e   :  { %73 = vst [vmem:[#allocation5 + $0x160] sm:$0xff] %v25_v1 }
  0x1f   :  { %75 = vst [vmem:[#allocation5 + $0x170] sm:$0xff] %v25_v1 }
  0x20   :  { %77 = vst [vmem:[#allocation5 + $0x180] sm:$0xff] %v25_v1 }
  0x21   :  { %79 = vst [vmem:[#allocation5 + $0x190] sm:$0xff] %v25_v1 }
  0x22   :  { %81 = vst [vmem:[#allocation5 + $0x1a0] sm:$0xff] %v25_v1 }
  0x23   :  { %83 = vst [vmem:[#allocation5 + $0x1b0] sm:$0xff] %v25_v1 }
  0x24   :  { %85 = vst [vmem:[#allocation5 + $0x1c0] sm:$0xff] %v25_v1 }
  0x25   :  { %87 = vst [vmem:[#allocation5 + $0x1d0] sm:$0xff] %v25_v1 }
  0x26   :  { %89 = vst [vmem:[#allocation5 + $0x1e0] sm:$0xff] %v25_v1 }
  0x27   :  { %91 = vst [vmem:[#allocation5 + $0x1f0] sm:$0xff] %v25_v1 }
  0x28   :  { %30 = vst [vmem:[#allocation5 + $0x8] sm:$0xff] %v26_v2 }
  0x29   :  { %32 = vst [vmem:[#allocation5 + $0x18] sm:$0xff] %v26_v2 }
  0x2a   :  { %34 = vst [vmem:[#allocation5 + $0x28] sm:$0xff] %v26_v2 }
  0x2b   :  { %36 = vst [vmem:[#allocation5 + $0x38] sm:$0xff] %v26_v2 }
  0x2c   :  { %38 = vst [vmem:[#allocation5 + $0x48] sm:$0xff] %v26_v2 }
  0x2d   :  { %40 = vst [vmem:[#allocation5 + $0x58] sm:$0xff] %v26_v2 }
  0x2e   :  { %42 = vst [vmem:[#allocation5 + $0x68] sm:$0xff] %v26_v2 }
  0x2f   :  { %44 = vst [vmem:[#allocation5 + $0x78] sm:$0xff] %v26_v2 }
  0x30   :  { %46 = vst [vmem:[#allocation5 + $0x88] sm:$0xff] %v26_v2 }
  0x31   :  { %48 = vst [vmem:[#allocation5 + $0x98] sm:$0xff] %v26_v2 }
  0x32   :  { %50 = vst [vmem:[#allocation5 + $0xa8] sm:$0xff] %v26_v2 }
  0x33   :  { %52 = vst [vmem:[#allocation5 + $0xb8] sm:$0xff] %v26_v2 }
  0x34   :  { %54 = vst [vmem:[#allocation5 + $0xc8] sm:$0xff] %v26_v2 }
  0x35   :  { %56 = vst [vmem:[#allocation5 + $0xd8] sm:$0xff] %v26_v2 }
  0x36   :  { %58 = vst [vmem:[#allocation5 + $0xe8] sm:$0xff] %v26_v2 }
  0x37   :  { %60 = vst [vmem:[#allocation5 + $0xf8] sm:$0xff] %v26_v2 }
  0x38   :  { %62 = vst [vmem:[#allocation5 + $0x108] sm:$0xff] %v26_v2 }
  0x39   :  { %64 = vst [vmem:[#allocation5 + $0x118] sm:$0xff] %v26_v2 }
  0x3a   :  { %66 = vst [vmem:[#allocation5 + $0x128] sm:$0xff] %v26_v2 }
  0x3b   :  { %68 = vst [vmem:[#allocation5 + $0x138] sm:$0xff] %v26_v2 }
  0x3c   :  { %70 = vst [vmem:[#allocation5 + $0x148] sm:$0xff] %v26_v2 }
  0x3d   :  { %72 = vst [vmem:[#allocation5 + $0x158] sm:$0xff] %v26_v2 }
  0x3e   :  { %74 = vst [vmem:[#allocation5 + $0x168] sm:$0xff] %v26_v2 }
  0x3f   :  { %76 = vst [vmem:[#allocation5 + $0x178] sm:$0xff] %v26_v2 }
  0x40   :  { %78 = vst [vmem:[#allocation5 + $0x188] sm:$0xff] %v26_v2 }
  0x41   :  { %80 = vst [vmem:[#allocation5 + $0x198] sm:$0xff] %v26_v2 }
  0x42   :  { %82 = vst [vmem:[#allocation5 + $0x1a8] sm:$0xff] %v26_v2 }
  0x43   :  { %84 = vst [vmem:[#allocation5 + $0x1b8] sm:$0xff] %v26_v2 }
  0x44   :  { %86 = vst [vmem:[#allocation5 + $0x1c8] sm:$0xff] %v26_v2 }
  0x45   :  { %88 = vst [vmem:[#allocation5 + $0x1d8] sm:$0xff] %v26_v2 }
  0x46   :  { %90 = vst [vmem:[#allocation5 + $0x1e8] sm:$0xff] %v26_v2 }
  0x47   :  { %92 = vst [vmem:[#allocation5 + $0x1f8] sm:$0xff] %v26_v2 }
  0x48   :  { %105 = dma.vmem_to_hbm [thread:$0]  %s98_s11, 8192, %s100_s14, [#allocation4], %s170_s15, %s170_s15, %s171_s16  }
  0x49   :  { %166 = dma.done.wait [#allocation4], 8192  }
  0x4a   :  { %167 = vsyncadd [#allocation4], 4294959104 }
  0x4b   :  { %110 = vsyncpa [#allocation3], 1 }
  0x4c   :  { %111 = vsyncpa [#allocation4], 1 }

</bundles_post_ra>
